<compile_context>
chip_gen: v7x
topology: tpu7x:2x2x1
jax: 0.10.0
libtpu: 0.0.40
codegen_flags: <defaults>
</compile_context>

<pallas_src>
import jax
import jax.numpy as jnp
from jax.experimental import pallas as pl
from jax.experimental.pallas import tpu as pltpu

_SUBLANE = 8
_VPU_FIRST_LAYER_MAX_K = 8   # contraction dims this small skip the MXU


def _make_mlp_kernel(num_layers: int, vpu_first: bool):
    """Fused MLP kernel: all Linear(+ReLU) layers executed per batch tile.

    refs = (x_ref, w1, b1, w2, b2, ..., wN, bN, out_ref)
    weights are (in, out); biases are (1, out); accumulation is f32.
    """

    def kernel(*refs):
        x_ref = refs[0]
        out_ref = refs[-1]
        h = x_ref[...].astype(jnp.float32)
        for i in range(num_layers):
            w = refs[1 + 2 * i][...].astype(jnp.float32)
            b = refs[2 + 2 * i][...].astype(jnp.float32)
            if i == 0 and vpu_first:
                # Tiny contraction dim: broadcast FMAs on the VPU instead of a
                # padded-to-128 MXU pass; bias folded into the first FMA.
                acc = b + h[:, 0:1] * w[0:1, :]
                for k in range(1, w.shape[0]):
                    acc = acc + h[:, k:k + 1] * w[k:k + 1, :]
                h = acc
            else:
                h = jnp.dot(h, w, preferred_element_type=jnp.float32) + b
            if i < num_layers - 1:      # ReLU on all but the last layer
                h = jnp.maximum(h, 0.0)
        out_ref[...] = h.astype(out_ref.dtype)

    return kernel


def quadrant_classifier_forward(x, params, *, tile_batch=8192,
                                vmem_limit_bytes=32 * 1024 * 1024):
    """Forward pass of QuadrantClassifier.

    params: list of (weight, bias) with weight (in_features, out_features)
            and bias (1, out_features) -- i.e. already transposed relative to
            PyTorch nn.Linear's (out, in) / (out,) storage.
    """
    num_layers = len(params)
    batch, in_dim = x.shape
    out_dim = params[-1][0].shape[1]

    # --- batch tile -----------------------------------------------------
    # Multiple of 8 sublanes; large by default to amortize per-step overhead.
    batch_8 = max(_SUBLANE, pl.cdiv(batch, _SUBLANE) * _SUBLANE)
    tb = min(tile_batch, batch_8)
    tb = max(_SUBLANE, (tb // _SUBLANE) * _SUBLANE)
    # Keep >= 2 grid steps when there is enough work so v7x's 2 TensorCores
    # both get a shard (harmless on single-TC v5e/v6e).
    if pl.cdiv(batch_8, tb) < 2 and batch_8 >= 2 * _SUBLANE:
        tb = max(_SUBLANE, ((batch_8 // 2) // _SUBLANE) * _SUBLANE)
    grid = (pl.cdiv(batch, tb),)   # partial last block handled by Pallas

    # --- operands / specs -------------------------------------------------
    operands = [x]
    in_specs = [pl.BlockSpec((tb, in_dim), lambda i: (i, 0))]
    for w, b in params:
        operands += [w, b]
        # Whole weight/bias as a single block pinned to block index (0, 0) for
        # every grid step -> stays VMEM-resident, no re-DMA per batch tile.
        in_specs.append(pl.BlockSpec(w.shape, lambda i: (0, 0)))
        in_specs.append(pl.BlockSpec(b.shape, lambda i: (0, 0)))

    vpu_first = params[0][0].shape[0] <= _VPU_FIRST_LAYER_MAX_K

    out = pl.pallas_call(
        _make_mlp_kernel(num_layers, vpu_first),
        out_shape=jax.ShapeDtypeStruct((batch, out_dim), jnp.float32),
        grid=grid,
        in_specs=in_specs,
        # last dim == full array dim -> satisfies the (8,128) rule unpadded.
        out_specs=pl.BlockSpec((tb, out_dim), lambda i: (i, 0)),
        compiler_params=pltpu.CompilerParams(
            dimension_semantics=("parallel",),   # v7x: shard tiles over 2 TCs
            vmem_limit_bytes=vmem_limit_bytes,
        ),
    )(*operands)

    return out   # already exactly (batch, out_dim); no slicing pass needed


def _init_params(key, layer_sizes):
    """nn.Linear-style init, stored pre-transposed: w (in, out), b (1, out)."""
    params = []
    for fan_in, fan_out in layer_sizes:
        key, kw, kb = jax.random.split(key, 3)
        bound = 1.0 / (fan_in ** 0.5)
        w = jax.random.uniform(kw, (fan_in, fan_out), jnp.float32, -bound, bound)
        b = jax.random.uniform(kb, (1, fan_out), jnp.float32, -bound, bound)
        params.append((w, b))
    return params


def _reference_forward(x, params):
    h = x
    for i, (w, b) in enumerate(params):
        h = h @ w + b
        if i < len(params) - 1:
            h = jnp.maximum(h, 0.0)
    return h


if __name__ == "__main__":
    # setLayers([(2, 32), (32, 32), (32, 4)]): 2-D point -> 4 quadrant logits.
    layer_sizes = [(2, 32), (32, 32), (32, 4)]

    key = jax.random.PRNGKey(0)
    key, kx_small, kx_big = jax.random.split(key, 3)
    params = _init_params(key, layer_sizes)

    # Small case (the original toy problem size): single tile, grid=(1,).
    x_small = jax.random.normal(kx_small, (8, layer_sizes[0][0]), jnp.float32)
    out_small = jax.block_until_ready(quadrant_classifier_forward(x_small, params))
    ref_small = _reference_forward(x_small, params)
    assert out_small.shape == (8, layer_sizes[-1][1]), out_small.shape
    assert jnp.allclose(out_small, ref_small, atol=1e-5, rtol=1e-5), \
        "small-batch mismatch vs pure-JAX reference"

    # Ragged batch, small tile: exercises multi-step grid + partial last block.
    x_big = jax.random.normal(kx_big, (300, layer_sizes[0][0]), jnp.float32)
    out_big = jax.block_until_ready(
        quadrant_classifier_forward(x_big, params, tile_batch=128))
    ref_big = _reference_forward(x_big, params)
    assert out_big.shape == (300, layer_sizes[-1][1]), out_big.shape
    assert jnp.allclose(out_big, ref_big, atol=1e-5, rtol=1e-5), \
        "large-batch (tiled) mismatch vs pure-JAX reference"

    # Same ragged batch with the default (large) tile: single-tile-would-be
    # case gets auto-split into 2 steps for v7x, still correct.
    out_big2 = jax.block_until_ready(quadrant_classifier_forward(x_big, params))
    assert jnp.allclose(out_big2, ref_big, atol=1e-5, rtol=1e-5), \
        "large-batch (default tile) mismatch vs pure-JAX reference"

    print("KERNEL_OK")
</pallas_src>

<mosaic_0001>
module attributes {stable_mosaic.version = 11 : i64} {
  func.func @kernel(%arg0: i32, %arg1: memref<8x2xf32, #tpu.memory_space<vmem>>, %arg2: memref<2x32xf32, #tpu.memory_space<vmem>>, %arg3: memref<1x32xf32, #tpu.memory_space<vmem>>, %arg4: memref<32x32xf32, #tpu.memory_space<vmem>>, %arg5: memref<1x32xf32, #tpu.memory_space<vmem>>, %arg6: memref<32x4xf32, #tpu.memory_space<vmem>>, %arg7: memref<1x4xf32, #tpu.memory_space<vmem>>, %arg8: memref<8x4xf32, #tpu.memory_space<vmem>>) attributes {dimension_semantics = [#tpu.dimension_semantics<parallel>], iteration_bounds = array<i64: 1>, scalar_prefetch = 0 : i64, scratch_operands = 0 : i64, tpu.core_type = #tpu.core_type<tc>, window_params = [{transform_indices = @transform_0, window_bounds = array<i64: 8, 2>}, {pipeline_mode = #tpu.pipeline_mode<synchronous>, transform_indices = @transform_1, window_bounds = array<i64: 2, 32>}, {pipeline_mode = #tpu.pipeline_mode<synchronous>, transform_indices = @transform_2, window_bounds = array<i64: 1, 32>}, {pipeline_mode = #tpu.pipeline_mode<synchronous>, transform_indices = @transform_3, window_bounds = array<i64: 32, 32>}, {pipeline_mode = #tpu.pipeline_mode<synchronous>, transform_indices = @transform_4, window_bounds = array<i64: 1, 32>}, {pipeline_mode = #tpu.pipeline_mode<synchronous>, transform_indices = @transform_5, window_bounds = array<i64: 32, 4>}, {pipeline_mode = #tpu.pipeline_mode<synchronous>, transform_indices = @transform_6, window_bounds = array<i64: 1, 4>}, {transform_indices = @transform_7, window_bounds = array<i64: 8, 4>}]} {
    %c0 = arith.constant 0 : index
    %c0_0 = arith.constant 0 : index
    %0 = vector.load %arg1[%c0, %c0_0] : memref<8x2xf32, #tpu.memory_space<vmem>>, vector<8x2xf32>
    %c0_1 = arith.constant 0 : index
    %c0_2 = arith.constant 0 : index
    %1 = vector.load %arg2[%c0_1, %c0_2] : memref<2x32xf32, #tpu.memory_space<vmem>>, vector<2x32xf32>
    %c0_3 = arith.constant 0 : index
    %c0_4 = arith.constant 0 : index
    %2 = vector.load %arg3[%c0_3, %c0_4] : memref<1x32xf32, #tpu.memory_space<vmem>>, vector<1x32xf32>
    %3 = vector.extract_strided_slice %0 {offsets = [0, 0], sizes = [8, 1], strides = [1, 1]} : vector<8x2xf32> to vector<8x1xf32>
    %4 = vector.extract_strided_slice %1 {offsets = [0, 0], sizes = [1, 32], strides = [1, 1]} : vector<2x32xf32> to vector<1x32xf32>
    %5 = vector.broadcast %3 : vector<8x1xf32> to vector<8x32xf32>
    %6 = vector.broadcast %4 : vector<1x32xf32> to vector<8x32xf32>
    %7 = arith.mulf %5, %6 : vector<8x32xf32>
    %8 = vector.broadcast %2 : vector<1x32xf32> to vector<8x32xf32>
    %9 = arith.addf %8, %7 : vector<8x32xf32>
    %10 = vector.extract_strided_slice %0 {offsets = [0, 1], sizes = [8, 1], strides = [1, 1]} : vector<8x2xf32> to vector<8x1xf32>
    %11 = vector.extract_strided_slice %1 {offsets = [1, 0], sizes = [1, 32], strides = [1, 1]} : vector<2x32xf32> to vector<1x32xf32>
    %12 = vector.broadcast %10 : vector<8x1xf32> to vector<8x32xf32>
    %13 = vector.broadcast %11 : vector<1x32xf32> to vector<8x32xf32>
    %14 = arith.mulf %12, %13 : vector<8x32xf32>
    %15 = arith.addf %9, %14 : vector<8x32xf32>
    %cst = arith.constant 0.000000e+00 : f32
    %16 = vector.broadcast %cst : f32 to vector<8x32xf32>
    %17 = arith.maximumf %15, %16 : vector<8x32xf32>
    %c0_5 = arith.constant 0 : index
    %c0_6 = arith.constant 0 : index
    %18 = vector.load %arg4[%c0_5, %c0_6] : memref<32x32xf32, #tpu.memory_space<vmem>>, vector<32x32xf32>
    %c0_7 = arith.constant 0 : index
    %c0_8 = arith.constant 0 : index
    %19 = vector.load %arg5[%c0_7, %c0_8] : memref<1x32xf32, #tpu.memory_space<vmem>>, vector<1x32xf32>
    %cst_9 = arith.constant dense<0.000000e+00> : vector<8x32xf32>
    %20 = tpu.matmul %17, %18, %cst_9 {dimension_numbers = #tpu.dot_dimension_numbers<[1], [0], [0], [1], [0, 0, 1, 1], [], []>} : vector<8x32xf32>, vector<32x32xf32>, vector<8x32xf32> -> vector<8x32xf32>
    %21 = vector.broadcast %19 : vector<1x32xf32> to vector<8x32xf32>
    %22 = arith.addf %20, %21 : vector<8x32xf32>
    %cst_10 = arith.constant 0.000000e+00 : f32
    %23 = vector.broadcast %cst_10 : f32 to vector<8x32xf32>
    %24 = arith.maximumf %22, %23 : vector<8x32xf32>
    %c0_11 = arith.constant 0 : index
    %c0_12 = arith.constant 0 : index
    %25 = vector.load %arg6[%c0_11, %c0_12] : memref<32x4xf32, #tpu.memory_space<vmem>>, vector<32x4xf32>
    %c0_13 = arith.constant 0 : index
    %c0_14 = arith.constant 0 : index
    %26 = vector.load %arg7[%c0_13, %c0_14] : memref<1x4xf32, #tpu.memory_space<vmem>>, vector<1x4xf32>
    %cst_15 = arith.constant dense<0.000000e+00> : vector<8x4xf32>
    %27 = tpu.matmul %24, %25, %cst_15 {dimension_numbers = #tpu.dot_dimension_numbers<[1], [0], [0], [1], [0, 0, 1, 1], [], []>} : vector<8x32xf32>, vector<32x4xf32>, vector<8x4xf32> -> vector<8x4xf32>
    %28 = vector.broadcast %26 : vector<1x4xf32> to vector<8x4xf32>
    %29 = arith.addf %27, %28 : vector<8x4xf32>
    %c0_16 = arith.constant 0 : index
    %c0_17 = arith.constant 0 : index
    %30 = vector.load %arg8[%c0_16, %c0_17] : memref<8x4xf32, #tpu.memory_space<vmem>>, vector<8x4xf32>
    tpu.vector_store %arg8[%c0_16, %c0_17], %29 {strides = array<i32>} : memref<8x4xf32, #tpu.memory_space<vmem>>, vector<8x4xf32>,
    return
  }
  func.func @transform_0(%arg0: i32) -> (i32, i32) {
    %c0_i32 = arith.constant 0 : i32
    %c0_i32_0 = arith.constant 0 : i32
    return %arg0, %c0_i32 : i32, i32
  }
  func.func @transform_1(%arg0: i32) -> (i32, i32) {
    %c0_i32 = arith.constant 0 : i32
    %c0_i32_0 = arith.constant 0 : i32
    %c0_i32_1 = arith.constant 0 : i32
    return %c0_i32, %c0_i32_0 : i32, i32
  }
  func.func @transform_2(%arg0: i32) -> (i32, i32) {
    %c0_i32 = arith.constant 0 : i32
    %c0_i32_0 = arith.constant 0 : i32
    %c0_i32_1 = arith.constant 0 : i32
    return %c0_i32, %c0_i32_0 : i32, i32
  }
  func.func @transform_3(%arg0: i32) -> (i32, i32) {
    %c0_i32 = arith.constant 0 : i32
    %c0_i32_0 = arith.constant 0 : i32
    %c0_i32_1 = arith.constant 0 : i32
    return %c0_i32, %c0_i32_0 : i32, i32
  }
  func.func @transform_4(%arg0: i32) -> (i32, i32) {
    %c0_i32 = arith.constant 0 : i32
    %c0_i32_0 = arith.constant 0 : i32
    %c0_i32_1 = arith.constant 0 : i32
    return %c0_i32, %c0_i32_0 : i32, i32
  }
  func.func @transform_5(%arg0: i32) -> (i32, i32) {
    %c0_i32 = arith.constant 0 : i32
    %c0_i32_0 = arith.constant 0 : i32
    %c0_i32_1 = arith.constant 0 : i32
    return %c0_i32, %c0_i32_0 : i32, i32
  }
  func.func @transform_6(%arg0: i32) -> (i32, i32) {
    %c0_i32 = arith.constant 0 : i32
    %c0_i32_0 = arith.constant 0 : i32
    %c0_i32_1 = arith.constant 0 : i32
    return %c0_i32, %c0_i32_0 : i32, i32
  }
  func.func @transform_7(%arg0: i32) -> (i32, i32) {
    %c0_i32 = arith.constant 0 : i32
    %c0_i32_0 = arith.constant 0 : i32
    return %arg0, %c0_i32 : i32, i32
  }
}

</mosaic_0001>

<bundles_post_ra>
// kernel: tpu_custom_call.1
= control target key start
LH: loop header
LB: loop body
LE: loop exit
PB: predicated region body
PF: predicated region fallthrough
CT: control target
= control target key end

     0   :  { %v289_v0 = vmov 0   ;;  %v290_v5 = vmov 0.0|0.0   ;;  %v291_v6 = vmov 1   ;;  %vm292_vm0 = vmmov 0   ;;  %s376_s0 = inlined_call_operand.vmem [shape: f32[8,2], index: 0, kind: input, shape index: {}]   ;;  %s377_s3 = inlined_call_operand.vmem [shape: f32[32,32], index: 3, kind: input, shape index: {}]   ;;  %s378_s5 = inlined_call_operand.vmem [shape: f32[32,4], index: 5, kind: input, shape index: {}]   ;;  %s379_s1 = inlined_call_operand.vmem [shape: f32[2,32], index: 1, kind: input, shape index: {}]   ;;  %s380_s2 = inlined_call_operand.vmem [shape: f32[1,32], index: 2, kind: input, shape index: {}]   ;;  %s381_s4 = inlined_call_operand.vmem [shape: f32[1,32], index: 4, kind: input, shape index: {}]   ;;  %s382_s6 = inlined_call_operand.vmem [shape: f32[1,4], index: 6, kind: input, shape index: {}]   ;;  %s383_s7 = inlined_call_operand.vmem [shape: f32[8,4], index: 7, kind: output, shape index: {}]  }
   0x1   :  { %287 = vset.pattern.permute.xlu0 %v289_v0  ;;  %v26_v1 = vld [vmem:[%s376_s0] sm:$0xff]  ;;  %v58_v3 = vld [vmem:[%s377_s3 + $0x8] sm:$0xff]  ;;  %270 = vmatprep.subr.bf16.mxu0 %v290_v5  ;;  %v59_v7 = vld [vmem:[%s377_s3 + $0x10] sm:$0xff]  ;;  %v293_v10 = vmov 0.0   ;;  %v34_v14 = vlaneseq  ;;  %vm68_vm1 = vcmask 261120   ;;  %vm227_vm2 = vcmask 31744  }
   0x2   :  { %31 = vperm.xlu0 %287, %v26_v1   ;;  %v57_v2 = vld [vmem:[%s377_s3] sm:$0xff]  ;;  %276 = vmatprep.subr.bf16.mxu1 %v290_v5  ;;  %v60_v8 = vld [vmem:[%s377_s3 + $0x18] sm:$0xff]  ;;  %v144_v12 = vld [vmem:[%s378_s5 + $0x8] sm:$0xff] }
   0x3   :  { %v271_v4 = vpack.c.bf16 %v58_v3, %v57_v2  ;;  %v274_v9 = vpack.c.bf16 %v60_v8, %v59_v7  ;;  %256 = vmatprep.mubr.msk.f32.mxu0 %vm292_vm0, %v293_v10  ;;  %267 = vmatprep.mubr.msk.f32.mxu1 %vm292_vm0, %v293_v10  ;;  %v143_v11 = vld [vmem:[%s378_s5] sm:$0xff]  ;;  %v35_v15 = vshrl.u32 %v34_v14, 7  ;;  %v145_v29 = vld [vmem:[%s378_s5 + $0x10] sm:$0xff]  ;;  %v146_v30 = vld [vmem:[%s378_s5 + $0x18] sm:$0xff] }
   0x4   :  { %v277_v13 = vpack.c.bf16 %v144_v12, %v143_v11  ;;  %v27_v17 = vld [vmem:[%s379_s1] sm:$0x3]  ;;  %v280_v31 = vpack.c.bf16 %v146_v30, %v145_v29 }
   0x5   :  { %272 = vmatpush3.bf16.msra.mxu0 %v271_v4  ;;  %v36_v16 = vsub.s32 0, %v35_v15  ;;  %v52_v19 = vsub.s32 1, %v35_v15  ;;  %v233_v23 = vld [vmem:[%s380_s2] ss:$0 sm:$0xff] }
   0x6   :  { %288 = vset.pattern.permute.xlu0 %v291_v6  ;;  %273 = vmatprep.subr.bf16.mxu0 %v290_v5  ;;  %v234_v32 = vld [vmem:[%s381_s4] ss:$0 sm:$0xff] }
   0x7   :  { %47 = vperm.xlu0 %288, %v26_v1   ;;  %278 = vmatpush3.bf16.msra.mxu1 %v277_v13  ;;  %v37_v18 = vrot.slane %v27_v17, %v36_v16  ;;  %v53_v22 = vrot.slane %v27_v17, %v52_v19  ;;  %v236_v37 = vld [vmem:[%s382_s6] ss:$0 sm:$0xff] }
   0x8   :  { %279 = vmatprep.subr.bf16.mxu1 %v290_v5 }
   0x9   :  { %275 = vmatpush3.bf16.msra.mxu0 %v274_v9 }
   0xb   :  { %281 = vmatpush3.bf16.msra.mxu1 %v280_v31 }
  0x81   :  { %v32_v20 = vpop.permute.xlu0 %31 }
  0x82   :  { %v38_v21 = vmul.f32 %v37_v18, %v32_v20 }
  0x84   :  { %v45_v25 = vadd.f32 %v233_v23, %v38_v21 }
  0x86   :  { %v48_v24 = vpop.permute.xlu0 %47 }
  0x87   :  { %v54_v26 = vmul.f32 %v53_v22, %v48_v24 }
  0x89   :  { %v55_v27 = vadd.f32 %v54_v26, %v45_v25 }
  0x8b   :  { %v56_v28 = vmax.f32 %v55_v27, 0.0 }
  0x8d   :  { %257 = vmatmul.mubr.msk.f32.vlgmr.msra.gmra.mrb[0].mxu0 %vm68_vm1, %v56_v28 }
 0x160   :  { %v138_v33 = vpop.f32.mrb[0].mxu0 }
 0x161   :  { %v139_v34 = vadd.f32 %v234_v32, %v138_v33  ;;  %v258_v35 = vpop.f32.mrb[1].mxu0 }
 0x163   :  { %v142_v36 = vmax.f32 %v139_v34, 0.0 }
 0x165   :  { %268 = vmatmul.mubr.msk.f32.vlgmr.msra.gmra.mrb[0].mxu1 %vm68_vm1, %v142_v36 }
 0x238   :  { %v223_v38 = vpop.f32.mrb[0].mxu1 }
 0x239   :  { %v224_v39 = vadd.f32 %v236_v37, %v223_v38  ;;  %v269_v40 = vpop.f32.mrb[1].mxu1 }
 0x23b   :  { %228 = vst.msk [vmem:[%s383_s7] sm:$0xff] %vm227_vm2, %v224_v39 }

</bundles_post_ra>
